<compile_context>
chip_gen: v5e
topology: v5e:2x2
jax: 0.10.0
libtpu: 0.0.40
codegen_flags: <defaults>
</compile_context>

<pallas_src>
import functools

import jax
import jax.numpy as jnp
from jax.experimental import pallas as pl
from jax.experimental.pallas import tpu as pltpu


def _vq_kernel(z_ref, w_ref, wsq_ref, q_ref, sse_ref):
    """Quantize one (C, TILE_S) NCHW block of latents.

    z_ref:   (1, D, TS)  block of z viewed as (N, C, S)
    w_ref:   (K, D)      full codebook
    wsq_ref: (K, 1)      precomputed ||w_k||^2
    q_ref:   (1, D, TS)  quantized block (nearest codebook vector per column)
    sse_ref: (1, 1, 1, 1) per-tile partial sum of squared error (q - z)^2
    """
    z = z_ref[0]                      # (D, TS) f32
    w = w_ref[...]                    # (K, D)  f32
    wsq = wsq_ref[...]                # (K, 1)  f32

    # Squared-L2 distance up to the per-column constant ||z||^2 (dropping it
    # is order-preserving for the argmin):  ||w||^2 - 2 W z   -> (K, TS)
    cross = jnp.dot(w, z, preferred_element_type=jnp.float32)   # MXU, (K, TS)
    dist = wsq - 2.0 * cross                                    # (K, TS)

    # First-minimum one-hot along K (matches torch.argmin tie-break) using
    # only min-reductions / compares (no arg-reduction lowering needed).
    k_dim, ts = dist.shape
    min_d = jnp.min(dist, axis=0, keepdims=True)                # (1, TS)
    k_iota = jax.lax.broadcasted_iota(jnp.int32, (k_dim, ts), 0)
    first_k = jnp.min(jnp.where(dist == min_d, k_iota, k_dim),
                      axis=0, keepdims=True)                    # (1, TS)
    onehot = (k_iota == first_k).astype(jnp.float32)            # (K, TS)

    # quantized = W^T @ onehot  -> (D, TS), already in NCHW orientation.
    q = jax.lax.dot_general(w, onehot, (((0,), (0,)), ((), ())),
                            preferred_element_type=jnp.float32)

    q_ref[0] = q.astype(q_ref.dtype)

    diff = q - z
    sse_ref[...] = jnp.sum(diff * diff).reshape(1, 1, 1, 1)


@functools.partial(jax.jit, static_argnames=("commitment_cost", "tile_s"))
def vector_quantizer_forward(z, embeddings, commitment_cost=0.25, tile_s=2048):
    """Forward pass of VectorQuantizer.

    z:          (N, C, H, W) float32  (NCHW, C == embedding_dim)
    embeddings: (K, C) float32 codebook
    returns:    (quantized_nchw, loss) matching the PyTorch forward values.
                (The straight-through estimator only changes gradients; the
                 forward value of `quantized` is the nearest codebook vector.)
    """
    n, c, h, w = z.shape
    k, d = embeddings.shape
    assert d == c

    s = h * w
    tile = s if s <= tile_s else tile_s
    assert s % tile == 0, "H*W must be divisible by the spatial tile"
    assert tile == s or tile % 128 == 0, "spatial tile must be lane-aligned"
    num_tiles = s // tile

    # Free reshape (contiguous last dims) -- no transpose, no extra HBM pass.
    z3 = z.reshape(n, c, s).astype(jnp.float32)
    w_f32 = embeddings.astype(jnp.float32)
    wsq = jnp.sum(w_f32 * w_f32, axis=1, keepdims=True)          # (K, 1)

    q3, sse = pl.pallas_call(
        _vq_kernel,
        out_shape=(
            jax.ShapeDtypeStruct((n, c, s), jnp.float32),
            jax.ShapeDtypeStruct((n, num_tiles, 1, 1), jnp.float32),
        ),
        grid_spec=pltpu.PrefetchScalarGridSpec(
            num_scalar_prefetch=0,
            grid=(n, num_tiles),
            in_specs=[
                pl.BlockSpec((1, c, tile), lambda b, t: (b, 0, t)),  # z block
                pl.BlockSpec((k, d), lambda b, t: (0, 0)),           # codebook
                pl.BlockSpec((k, 1), lambda b, t: (0, 0)),           # ||w||^2
            ],
            out_specs=[
                pl.BlockSpec((1, c, tile), lambda b, t: (b, 0, t)),  # quantized
                pl.BlockSpec((1, 1, 1, 1), lambda b, t: (b, t, 0, 0)),  # sse
            ],
        ),
        compiler_params=pltpu.CompilerParams(
            # No carried state -> both axes independent (v7x: shard over 2 TCs).
            dimension_semantics=("parallel", "parallel"),
            # Explicit scoped-VMEM budget so large spatial tiles don't trip the
            # conservative default limit (notably 16 MiB on v5e).
            vmem_limit_bytes=64 * 1024 * 1024,
        ),
    )(z3, w_f32, wsq)

    mse = jnp.sum(sse) / jnp.float32(n * c * s)
    # commitment_loss + codebook_loss (forward values are both mse(q, z))
    loss = (1.0 + jnp.float32(commitment_cost)) * mse

    return q3.reshape(n, c, h, w), loss
    # TODO(synk): straight-through estimator / detach() only affect gradients,
    # not the forward values returned here.


if __name__ == "__main__":
    # small, module-consistent shapes
    batch, embedding_dim, spatial = 2, 32, 16
    num_embeddings = 64
    commitment_cost = 0.25

    key = jax.random.PRNGKey(0)
    kz, kw = jax.random.split(key)

    # input latent z in NCHW
    z = jax.random.normal(kz, (batch, embedding_dim, spatial, spatial),
                          dtype=jnp.float32)
    # deterministic codebook init, uniform(-1/K, 1/K) like the PyTorch module
    embeddings = jax.random.uniform(
        kw, (num_embeddings, embedding_dim), dtype=jnp.float32,
        minval=-1.0 / num_embeddings, maxval=1.0 / num_embeddings)

    quantized, loss = vector_quantizer_forward(
        z, embeddings, commitment_cost=commitment_cost)
    jax.block_until_ready((quantized, loss))

    # lightweight sanity check against a pure-JAX reference (PyTorch math)
    z_nhwc = jnp.transpose(z, (0, 2, 3, 1)).reshape(-1, embedding_dim)
    dist = (jnp.sum(z_nhwc**2, 1, keepdims=True)
            - 2.0 * z_nhwc @ embeddings.T
            + jnp.sum(embeddings**2, 1))
    ref_q = embeddings[jnp.argmin(dist, axis=1)]
    ref_loss = (1.0 + commitment_cost) * jnp.mean((ref_q - z_nhwc) ** 2)
    ref_q_nchw = jnp.transpose(
        ref_q.reshape(batch, spatial, spatial, embedding_dim), (0, 3, 1, 2))

    assert jnp.allclose(quantized, ref_q_nchw, atol=1e-5)
    assert jnp.allclose(loss, ref_loss, atol=1e-5)

    print("KERNEL_OK")
</pallas_src>

<mosaic_0001>
module attributes {stable_mosaic.version = 11 : i64} {
  func.func @_vq_kernel(%arg0: i32, %arg1: i32, %arg2: memref<1x32x256xf32, #tpu.memory_space<vmem>>, %arg3: memref<64x32xf32, #tpu.memory_space<vmem>>, %arg4: memref<64x1xf32, #tpu.memory_space<vmem>>, %arg5: memref<1x32x256xf32, #tpu.memory_space<vmem>>, %arg6: memref<1x1x1x1xf32, #tpu.memory_space<vmem>>) attributes {dimension_semantics = [#tpu.dimension_semantics<parallel>, #tpu.dimension_semantics<parallel>], iteration_bounds = array<i64: 2, 1>, scalar_prefetch = 0 : i64, scratch_operands = 0 : i64, tpu.core_type = #tpu.core_type<tc>, window_params = [{transform_indices = @transform_0, window_bounds = array<i64: 1, 32, 256>}, {pipeline_mode = #tpu.pipeline_mode<synchronous>, transform_indices = @transform_1, window_bounds = array<i64: 64, 32>}, {pipeline_mode = #tpu.pipeline_mode<synchronous>, transform_indices = @transform_2, window_bounds = array<i64: 64, 1>}, {transform_indices = @transform_3, window_bounds = array<i64: 1, 32, 256>}, {transform_indices = @transform_4, window_bounds = array<i64: 1, 1, 1, 1>}]} {
    %c0 = arith.constant 0 : index
    %c0_0 = arith.constant 0 : index
    %c0_1 = arith.constant 0 : index
    %0 = vector.load %arg2[%c0, %c0_0, %c0_1] : memref<1x32x256xf32, #tpu.memory_space<vmem>>, vector<1x32x256xf32>
    %1 = vector.shape_cast %0 : vector<1x32x256xf32> to vector<32x256xf32>
    %c0_2 = arith.constant 0 : index
    %c0_3 = arith.constant 0 : index
    %2 = vector.load %arg3[%c0_2, %c0_3] : memref<64x32xf32, #tpu.memory_space<vmem>>, vector<64x32xf32>
    %c0_4 = arith.constant 0 : index
    %c0_5 = arith.constant 0 : index
    %3 = vector.load %arg4[%c0_4, %c0_5] : memref<64x1xf32, #tpu.memory_space<vmem>>, vector<64x1xf32>
    %cst = arith.constant dense<0.000000e+00> : vector<64x256xf32>
    %4 = tpu.matmul %2, %1, %cst {dimension_numbers = #tpu.dot_dimension_numbers<[1], [0], [0], [1], [0, 0, 1, 1], [], []>} : vector<64x32xf32>, vector<32x256xf32>, vector<64x256xf32> -> vector<64x256xf32>
    %cst_6 = arith.constant 2.000000e+00 : f32
    %5 = vector.broadcast %cst_6 : f32 to vector<64x256xf32>
    %6 = arith.mulf %5, %4 : vector<64x256xf32>
    %7 = vector.broadcast %3 : vector<64x1xf32> to vector<64x256xf32>
    %8 = arith.subf %7, %6 : vector<64x256xf32>
    %cst_7 = arith.constant dense<0x7F800000> : vector<256xf32>
    %9 = vector.multi_reduction <minimumf>, %8, %cst_7 [0] : vector<64x256xf32> to vector<256xf32>
    %10 = vector.shape_cast %9 : vector<256xf32> to vector<1x256xf32>
    %11 = tpu.iota {dimensions = array<i32: 0>} : vector<64x256xi32>
    %12 = vector.broadcast %10 : vector<1x256xf32> to vector<64x256xf32>
    %13 = arith.cmpf oeq, %8, %12 : vector<64x256xf32>
    %c64_i32 = arith.constant 64 : i32
    %14 = vector.broadcast %c64_i32 : i32 to vector<64x256xi32>
    %15 = arith.select %13, %11, %14 : vector<64x256xi1>, vector<64x256xi32>
    %cst_8 = arith.constant dense<2147483647> : vector<256xi32>
    %16 = vector.multi_reduction <minsi>, %15, %cst_8 [0] : vector<64x256xi32> to vector<256xi32>
    %17 = vector.shape_cast %16 : vector<256xi32> to vector<1x256xi32>
    %18 = vector.broadcast %17 : vector<1x256xi32> to vector<64x256xi32>
    %19 = arith.cmpi eq, %11, %18 : vector<64x256xi32>
    %20 = arith.extui %19 : vector<64x256xi1> to vector<64x256xi32>
    %21 = arith.sitofp %20 : vector<64x256xi32> to vector<64x256xf32>
    %cst_9 = arith.constant dense<0.000000e+00> : vector<32x256xf32>
    %22 = tpu.matmul %2, %21, %cst_9 {dimension_numbers = #tpu.dot_dimension_numbers<[0], [0], [1], [1], [0, 1, 1, 1], [], []>} : vector<64x32xf32>, vector<64x256xf32>, vector<32x256xf32> -> vector<32x256xf32>
    %c0_10 = arith.constant 0 : index
    %c0_11 = arith.constant 0 : index
    %c0_12 = arith.constant 0 : index
    %23 = vector.load %arg5[%c0_10, %c0_11, %c0_12] : memref<1x32x256xf32, #tpu.memory_space<vmem>>, vector<1x32x256xf32>
    %24 = vector.shape_cast %23 : vector<1x32x256xf32> to vector<32x256xf32>
    %25 = vector.shape_cast %22 : vector<32x256xf32> to vector<1x32x256xf32>
    tpu.vector_store %arg5[%c0_10, %c0_11, %c0_12], %25 {strides = array<i32>} : memref<1x32x256xf32, #tpu.memory_space<vmem>>, vector<1x32x256xf32>,
    %26 = arith.subf %22, %1 : vector<32x256xf32>
    %27 = arith.mulf %26, %26 : vector<32x256xf32>
    %28 = vector.shape_cast %27 : vector<32x256xf32> to vector<1x32x256xf32>
    %cst_13 = arith.constant dense<0.000000e+00> : vector<1xf32>
    %29 = vector.multi_reduction <add>, %28, %cst_13 [1, 2] : vector<1x32x256xf32> to vector<1xf32>
    %30 = vector.shape_cast %29 : vector<1xf32> to vector<1x1x1xf32>
    %31 = vector.extract %30[0, 0, 0] : f32 from vector<1x1x1xf32>
    %32 = vector.broadcast %31 : f32 to vector<1x1x1x1xf32>
    %c0_14 = arith.constant 0 : index
    %c0_15 = arith.constant 0 : index
    %c0_16 = arith.constant 0 : index
    %c0_17 = arith.constant 0 : index
    %33 = vector.load %arg6[%c0_14, %c0_15, %c0_16, %c0_17] : memref<1x1x1x1xf32, #tpu.memory_space<vmem>>, vector<1x1x1x1xf32>
    tpu.vector_store %arg6[%c0_14, %c0_15, %c0_16, %c0_17], %32 {strides = array<i32>} : memref<1x1x1x1xf32, #tpu.memory_space<vmem>>, vector<1x1x1x1xf32>,
    return
  }
  func.func @transform_0(%arg0: i32, %arg1: i32) -> (i32, i32, i32) {
    %c0_i32 = arith.constant 0 : i32
    %c0_i32_0 = arith.constant 0 : i32
    return %arg0, %c0_i32, %arg1 : i32, i32, i32
  }
  func.func @transform_1(%arg0: i32, %arg1: i32) -> (i32, i32) {
    %c0_i32 = arith.constant 0 : i32
    %c0_i32_0 = arith.constant 0 : i32
    %c0_i32_1 = arith.constant 0 : i32
    return %c0_i32, %c0_i32_0 : i32, i32
  }
  func.func @transform_2(%arg0: i32, %arg1: i32) -> (i32, i32) {
    %c0_i32 = arith.constant 0 : i32
    %c0_i32_0 = arith.constant 0 : i32
    %c0_i32_1 = arith.constant 0 : i32
    return %c0_i32, %c0_i32_0 : i32, i32
  }
  func.func @transform_3(%arg0: i32, %arg1: i32) -> (i32, i32, i32) {
    %c0_i32 = arith.constant 0 : i32
    %c0_i32_0 = arith.constant 0 : i32
    return %arg0, %c0_i32, %arg1 : i32, i32, i32
  }
  func.func @transform_4(%arg0: i32, %arg1: i32) -> (i32, i32, i32, i32) {
    %c0_i32 = arith.constant 0 : i32
    %c0_i32_0 = arith.constant 0 : i32
    %c0_i32_1 = arith.constant 0 : i32
    return %arg0, %arg1, %c0_i32, %c0_i32_0 : i32, i32, i32, i32
  }
}

</mosaic_0001>

<bundles_post_ra>
// kernel: vector_quantizer_forward.1
= control target key start
LH: loop header
LB: loop body
LE: loop exit
PB: predicated region body
PF: predicated region fallthrough
CT: control target
= control target key end

     0   :  { %s1038_s15 = smov 0   ;;  %s1040_s16 = smov 0   ;;  %s1297_s0 = inlined_call_operand.vmem [shape: f32[2,32,256], index: 0, kind: input, shape index: {}]   ;;  %s1298_s1 = inlined_call_operand.vmem [shape: f32[64,32], index: 1, kind: input, shape index: {}]   ;;  %s1299_s2 = inlined_call_operand.vmem [shape: f32[64,1], index: 2, kind: input, shape index: {}]   ;;  %s1300_s3 = inlined_call_operand.vmem [shape: f32[2,32,256], index: 3, kind: output, shape index: {0}]   ;;  %s1301_s4 = inlined_call_operand.vmem [shape: f32[2,1,1,1], index: 4, kind: output, shape index: {1}]  }
   0x1   :  { %s1042_s17 = smov 0  }
   0x2 LB: > { %s27_s18 = sadd.s32 1, %s1005_s16  ;;  %p890_p0 = scmp.ge.s32.totalorder %s1009_s17, 1  ;;  %s1009_s17 = sphi %s1042_s17, %s15_s17   ;;  %s1005_s16 = sphi %s1040_s16, %s1303_s16   ;;  %s1001_s15 = sphi %s1038_s15, %s1302_s15  }
   0x3   : > { %p29_p1 = scmp.ge.s32.totalorder %s27_s18, 2  ;;  %p188_p2 = scmp.lt.s32.totalorder %s1009_s17, 3 }
   0x5   : > { %s1305_s18 = smov (%p29_p1, %s27_s18), 0  ;;  %p189_p3 = pnand %p890_p0, %p188_p2 }
   0x6   : > { %p229_p4 = scmp.lt.s32.totalorder (!%p189_p3), %s1001_s15, 1 }
   0x7   : > { %192 = sbr.rel (%p189_p3) target bundleno = 613 (0x265), region = 32 }
   0xc   : > { %v270_v0 = vld [vmem:[%s1299_s2] sm:$0xff]  ;;  %v1011_v1 = vmov 0   ;;  %s1307_s15 = smov (!%p229_p4, %s1001_s15), 1  ;;  %v271_v6 = vld [vmem:[%s1299_s2 + $0x8] sm:$0xff]  ;;  %v272_v9 = vld [vmem:[%s1299_s2 + $0x10] sm:$0xff]  ;;  %vm278_vm0 = vcmask 261120  }
   0xd   : > { %984 = vset.pattern.permute.xlu0 %v1011_v1  ;;  %985 = vset.pattern.permute.xlu1 %v1011_v1  ;;  %s953_s21 = sshll.u32 %s1307_s15, 6  ;;  %v274_v10 = vld [vmem:[%s1299_s2 + $0x20] sm:$0xff]  ;;  %v273_v14 = vld [vmem:[%s1299_s2 + $0x18] sm:$0xff]  ;;  %v275_v15 = vld [vmem:[%s1299_s2 + $0x28] sm:$0xff]  ;;  %s253_s12 = scalar_lea.vmem %s1301_s4, %s1307_s15 }
   0xe   : > { %403 = vperm.xlu0 %984, %v270_v0   ;;  %986 = vset.pattern.permute.xlu2 %v1011_v1  ;;  %s236_s24 = scalar_lea.vmem %s1297_s0, %s953_s21  ;;  %v262_v13 = vld [vmem:[%s1298_s1] sm:$0xff]  ;;  %v263_v16 = vld [vmem:[%s1298_s1 + $0x8] sm:$0xff]  ;;  %v264_v17 = vld [vmem:[%s1298_s1 + $0x10] sm:$0xff]  ;;  %s1266_s10 = scalar_lea.vmem %s1300_s3, %s953_s21 }
   0xf   : > { %v1067_v2 = vld [vmem:[%s236_s24 + $0x30] sm:$0xff]  ;;  %v1069_v3 = vld [vmem:[%s236_s24 + $0x38] sm:$0xff]  ;;  %v1071_v4 = vld [vmem:[%s236_s24 + $0x20] sm:$0xff]  ;;  %413 = vperm.xlu1 %985, %v272_v9   ;;  %423 = vperm.xlu2 %986, %v274_v10  }
  0x10   : > { %315 = vmatpush.msra.mxu0 %v1067_v2  ;;  %356 = vmatpush.msra.mxu1 %v1069_v3  ;;  %v1075_v5 = vld [vmem:[%s236_s24 + $0x28] sm:$0xff]  ;;  %v1080_v7 = vld [vmem:[%s236_s24 + $0x10] sm:$0xff]  ;;  %v1082_v8 = vld [vmem:[%s236_s24 + $0x18] sm:$0xff] }
  0x11   : > { %v1092_v11 = vld [vmem:[%s236_s24] sm:$0xff]  ;;  %v1094_v12 = vld [vmem:[%s236_s24 + $0x8] sm:$0xff]  ;;  %v277_v18 = vld [vmem:[%s1299_s2 + $0x38] sm:$0xff] }
  0x12   : > { %316 = vmatpush.msra.mxu0 %v1071_v4  ;;  %357 = vmatpush.msra.mxu1 %v1075_v5  ;;  %v276_v19 = vld [vmem:[%s1299_s2 + $0x30] sm:$0xff]  ;;  %v265_v20 = vld [vmem:[%s1298_s1 + $0x18] sm:$0xff]  ;;  %v266_v21 = vld [vmem:[%s1298_s1 + $0x20] sm:$0xff] }
  0x13   : > { %v267_v22 = vld [vmem:[%s1298_s1 + $0x28] sm:$0xff]  ;;  %v268_v23 = vld [vmem:[%s1298_s1 + $0x30] sm:$0xff]  ;;  %v269_v24 = vld [vmem:[%s1298_s1 + $0x38] sm:$0xff] }
  0x14   : > { %317 = vmatpush.msra.mxu0 %v1080_v7  ;;  %358 = vmatpush.msra.mxu1 %v1082_v8 }
  0x16   : > { %408 = vperm.xlu0 %984, %v271_v6   ;;  %318 = vmatpush.msra.mxu0 %v1092_v11 }
  0x17   : > { %359 = vmatpush.msra.mxu1 %v1094_v12  ;;  %895 = vmatmul.msk.f32.vlgmr.msra.gmra.mxu0 %vm278_vm0, %v262_v13 }
  0x18   : > { %903 = vmatmul.msk.f32.vlgmr.msra.gmra.mxu1 %vm278_vm0, %v262_v13  ;;  %418 = vperm.xlu1 %985, %v273_v14  }
  0x19   : > { %428 = vperm.xlu2 %986, %v275_v15  }
  0x1e   : > { %433 = vperm.xlu0 %984, %v276_v19  }
  0x1f   : > { %896 = vmatmul.msk.f32.gmra.mxu0 %vm278_vm0, %v263_v16 }
  0x20   : > { %904 = vmatmul.msk.f32.gmra.mxu1 %vm278_vm0, %v263_v16  ;;  %438 = vperm.xlu1 %985, %v277_v18  }
  0x27   : > { %897 = vmatmul.msk.f32.gmra.mxu0 %vm278_vm0, %v264_v17 }
  0x28   : > { %905 = vmatmul.msk.f32.gmra.mxu1 %vm278_vm0, %v264_v17 }
  0x2f   : > { %898 = vmatmul.msk.f32.gmra.mxu0 %vm278_vm0, %v265_v20 }
  0x30   : > { %906 = vmatmul.msk.f32.gmra.mxu1 %vm278_vm0, %v265_v20 }
  0x37   : > { %899 = vmatmul.msk.f32.gmra.mxu0 %vm278_vm0, %v266_v21 }
  0x38   : > { %907 = vmatmul.msk.f32.gmra.mxu1 %vm278_vm0, %v266_v21 }
  0x3f   : > { %900 = vmatmul.msk.f32.gmra.mxu0 %vm278_vm0, %v267_v22  ;;  %618 = vxpose.xlu2.b32.start [1/8] (short) (narrow) %v262_v13, 32 }
  0x40   : > { %908 = vmatmul.msk.f32.gmra.mxu1 %vm278_vm0, %v267_v22 }
  0x47   : > { %901 = vmatmul.msk.f32.gmra.mxu0 %vm278_vm0, %v268_v23  ;;  %619 = vxpose.xlu2.b32.cont [2/8] (short) (narrow) %v263_v16, 32 }
  0x48   : > { %909 = vmatmul.msk.f32.gmra.mxu1 %vm278_vm0, %v268_v23 }
  0x4f   : > { %902 = vmatmul.msk.f32.gmra.mxu0 %vm278_vm0, %v269_v24  ;;  %620 = vxpose.xlu2.b32.cont [3/8] (short) (narrow) %v264_v17, 32 }
  0x50   : > { %910 = vmatmul.msk.f32.gmra.mxu1 %vm278_vm0, %v269_v24 }
  0x57   : > { %621 = vxpose.xlu2.b32.cont [4/8] (short) (narrow) %v265_v20, 32 }
  0x5f   : > { %622 = vxpose.xlu2.b32.cont [5/8] (short) (narrow) %v266_v21, 32 }
  0x67   : > { %623 = vxpose.xlu2.b32.cont [6/8] (short) (narrow) %v267_v22, 32 }
  0x69   : > { %v424_v39 = vpop.permute.xlu2 %423 }
  0x6f   : > { %624 = vxpose.xlu2.b32.cont [7/8] (short) (narrow) %v268_v23, 32 }
  0x73   : > { %v429_v0 = vpop.permute.xlu2 %428 }
  0x77   : > { %625 = vxpose.xlu2.b32.end [8/8] (short) (narrow) %v269_v24, 32 }
  0x80   : > { %v404_v35 = vpop.permute.xlu0 %403 }
  0x81   : > { %v414_v36 = vpop.permute.xlu1 %413 }
  0x88   : > { %v409_v40 = vpop.permute.xlu0 %408 }
  0x8a   : > { %v419_v49 = vpop.permute.xlu1 %418 }
  0x90   : > { %v434_v15 = vpop.permute.xlu0 %433 }
  0x94   : > { %v320_v25 = vpop.f32.mrf.mxu0 }
  0x95   : > { %v361_v26 = vpop.f32.mrf.mxu1  ;;  %v385_v47 = vmul.f32 2.0, %v320_v25 }
  0x96   : > { %v386_v48 = vmul.f32 2.0, %v361_v26 }
  0x97   : > { %v1160_v60 = vsub.f32 %v404_v35, %v385_v47 }
  0x98   : > { %v1162_v61 = vsub.f32 %v404_v35, %v386_v48 }
  0x9c   : > { %v323_v27 = vpop.f32.mrf.mxu0 }
  0x9d   : > { %v364_v28 = vpop.f32.mrf.mxu1  ;;  %v387_v50 = vmul.f32 2.0, %v323_v27 }
  0x9e   : > { %v388_v51 = vmul.f32 2.0, %v364_v28  ;;  %v439_v28 = vpop.permute.xlu1 %438 }
  0x9f   : > { %v443_v1 = vsub.f32 %v409_v40, %v387_v50 }
  0xa0   : > { %v1164_v6 = vsub.f32 %v409_v40, %v388_v51 }
  0xa4   : > { %v326_v29 = vpop.f32.mrf.mxu0 }
  0xa5   : > { %v367_v30 = vpop.f32.mrf.mxu1  ;;  %v389_v41 = vmul.f32 2.0, %v326_v29 }
  0xa6   : > { %v390_v42 = vmul.f32 2.0, %v367_v30 }
  0xa7   : > { %v1152_v56 = vsub.f32 %v414_v36, %v389_v41  ;;  %v483_v41 = vlaneseq }
  0xa8   : > { %v1154_v57 = vsub.f32 %v414_v36, %v390_v42 }
  0xa9   : > { %v457_v16 = vmin.f32 %v1160_v60, %v1152_v56 }
  0xaa   : > { %v470_v17 = vmin.f32 %v1162_v61, %v1154_v57 }
  0xac   : > { %v329_v31 = vpop.f32.mrf.mxu0 }
  0xad   : > { %v370_v32 = vpop.f32.mrf.mxu1  ;;  %v391_v43 = vmul.f32 2.0, %v329_v31 }
  0xae   : > { %v392_v44 = vmul.f32 2.0, %v370_v32 }
  0xaf   : > { %v1156_v58 = vsub.f32 %v419_v49, %v391_v43 }
  0xb0   : > { %v1158_v59 = vsub.f32 %v419_v49, %v392_v44 }
  0xb1   : > { %v458_v18 = vmin.f32 %v443_v1, %v1156_v58 }
  0xb2   : > { %v471_v19 = vmin.f32 %v1164_v6, %v1158_v59 }
  0xb4   : > { %v332_v33 = vpop.f32.mrf.mxu0 }
  0xb5   : > { %v373_v34 = vpop.f32.mrf.mxu1  ;;  %v393_v52 = vmul.f32 2.0, %v332_v33 }
  0xb6   : > { %v394_v53 = vmul.f32 2.0, %v373_v34 }
  0xb7   : > { %v449_v9 = vsub.f32 %v424_v39, %v393_v52 }
  0xb8   : > { %v1166_v10 = vsub.f32 %v424_v39, %v394_v53 }
  0xb9   : > { %v459_v26 = vmin.f32 %v457_v16, %v449_v9 }
  0xba   : > { %v472_v27 = vmin.f32 %v470_v17, %v1166_v10 }
  0xbc   : > { %v335_v37 = vpop.f32.mrf.mxu0 }
  0xbd   : > { %v376_v38 = vpop.f32.mrf.mxu1  ;;  %v395_v54 = vmul.f32 2.0, %v335_v37 }
  0xbe   : > { %v396_v55 = vmul.f32 2.0, %v376_v38 }
  0xbf   : > { %v451_v13 = vsub.f32 %v429_v0, %v395_v54 }
  0xc0   : > { %v1168_v14 = vsub.f32 %v429_v0, %v396_v55 }
  0xc1   : > { %v460_v29 = vmin.f32 %v458_v18, %v451_v13 }
  0xc2   : > { %v473_v30 = vmin.f32 %v471_v19, %v1168_v14 }
  0xc4   : > { %v338_v45 = vpop.f32.mrf.mxu0 }
  0xc5   : > { %v379_v46 = vpop.f32.mrf.mxu1  ;;  %v397_v62 = vmul.f32 2.0, %v338_v45 }
  0xc6   : > { %v398_v63 = vmul.f32 2.0, %v379_v46  ;;  %v1185_v46 = vshrl.u32 %v483_v41, 7 }
  0xc7   : > { %v453_v22 = vsub.f32 %v434_v15, %v397_v62 }
  0xc8   : > { %v1177_v23 = vsub.f32 %v434_v15, %v398_v63  ;;  %v1188_v51 = vadd.s32 8, %v1185_v46  ;;  %v1191_v53 = vadd.s32 16, %v1185_v46  ;;  %v1194_v54 = vadd.s32 24, %v1185_v46 }
  0xc9   : > { %v461_v33 = vmin.f32 %v459_v26, %v453_v22  ;;  %v1197_v55 = vadd.s32 32, %v1185_v46  ;;  %v1200_v62 = vadd.s32 40, %v1185_v46  ;;  %v1203_v63 = vadd.s32 48, %v1185_v46 }
  0xca   : > { %v474_v34 = vmin.f32 %v472_v27, %v1177_v23  ;;  %v1206_v0 = vadd.s32 56, %v1185_v46 }
  0xcc   : > { %v341_v20 = vpop.f32.mrf.mxu0 }
  0xcd   : > { %v382_v21 = vpop.f32.mrf.mxu1  ;;  %v399_v24 = vmul.f32 2.0, %v341_v20 }
  0xce   : > { %v400_v25 = vmul.f32 2.0, %v382_v21 }
  0xcf   : > { %v455_v31 = vsub.f32 %v439_v28, %v399_v24 }
  0xd0   : > { %v1181_v32 = vsub.f32 %v439_v28, %v400_v25 }
  0xd1   : > { %v462_v35 = vmin.f32 %v460_v29, %v455_v31 }
  0xd2   : > { %v475_v36 = vmin.f32 %v473_v30, %v1181_v32 }
  0xd3   : > { %v463_v37 = vmin.f32 %v461_v33, %v462_v35 }
  0xd4   : > { %v476_v38 = vmin.f32 %v474_v34, %v475_v36 }
  0xd5   : > { %v464_v39 = vrot.slane %v463_v37, 4 }
  0xd6   : > { %v477_v40 = vrot.slane %v476_v38, 4 }
  0xd7   : > { %v465_v42 = vmin.f32 %v463_v37, %v464_v39 }
  0xd8   : > { %v478_v43 = vmin.f32 %v476_v38, %v477_v40 }
  0xd9   : > { %v466_v44 = vrot.slane %v465_v42, 2 }
  0xda   : > { %v479_v45 = vrot.slane %v478_v43, 2 }
  0xdb   : > { %v467_v47 = vmin.f32 %v465_v42, %v466_v44 }
  0xdc   : > { %v480_v48 = vmin.f32 %v478_v43, %v479_v45  ;;  %v1012_v43 = vmov 1.0  }
  0xdd   : > { %v468_v49 = vrot.slane %v467_v47, 1 }
  0xde   : > { %v481_v50 = vrot.slane %v480_v48, 1 }
  0xdf   : > { %v469_v52 = vmin.f32 %v467_v47, %v468_v49 }
  0xe0   : > { %v482_v15 = vmin.f32 %v480_v48, %v481_v50  ;;  %v634_v48 = vpop.trf.xlu2 }
  0xe1   : > { %vm492_vm1 = vcmp.eq.f32.partialorder %v1160_v60, %v469_v52  ;;  %vm494_vm2 = vcmp.eq.f32.partialorder %v443_v1, %v469_v52  ;;  %vm496_vm3 = vcmp.eq.f32.partialorder %v1152_v56, %v469_v52  ;;  %vm498_vm4 = vcmp.eq.f32.partialorder %v1156_v58, %v469_v52 }
  0xe2   : > { %vm500_vm5 = vcmp.eq.f32.partialorder %v449_v9, %v469_v52  ;;  %vm502_vm6 = vcmp.eq.f32.partialorder %v451_v13, %v469_v52  ;;  %vm504_vm7 = vcmp.eq.f32.partialorder %v453_v22, %v469_v52  ;;  %vm506_vm8 = vcmp.eq.f32.partialorder %v455_v31, %v469_v52 }
  0xe3   : > { %v508_v16 = vsel %vm492_vm1, %v1185_v46, 64  ;;  %v510_v17 = vsel %vm494_vm2, %v1188_v51, 64  ;;  %v512_v18 = vsel %vm496_vm3, %v1191_v53, 64  ;;  %v514_v19 = vsel %vm498_vm4, %v1194_v54, 64 }
  0xe4   : > { %v516_v20 = vsel %vm500_vm5, %v1197_v55, 64  ;;  %v518_v60 = vsel %vm502_vm6, %v1200_v62, 64  ;;  %v520_v56 = vsel %vm504_vm7, %v1203_v63, 64  ;;  %v522_v58 = vsel %vm506_vm8, %v1206_v0, 64 }
  0xe5   : > { %vm524_vm9 = vcmp.lt.s32.totalorder %v508_v16, %v512_v18  ;;  %vm526_vm10 = vcmp.lt.s32.totalorder %v510_v17, %v514_v19  ;;  %vm493_vm11 = vcmp.eq.f32.partialorder %v1162_v61, %v482_v15  ;;  %vm495_vm12 = vcmp.eq.f32.partialorder %v1164_v6, %v482_v15 }
  0xe6   : > { %v525_v1 = vsel %vm524_vm9, %v508_v16, %v512_v18  ;;  %v527_v9 = vsel %vm526_vm10, %v510_v17, %v514_v19  ;;  %vm497_vm15 = vcmp.eq.f32.partialorder %v1154_v57, %v482_v15  ;;  %vm499_vm0 = vcmp.eq.f32.partialorder %v1158_v59, %v482_v15 }
  0xe7   : > { %vm528_vm13 = vcmp.lt.s32.totalorder %v525_v1, %v516_v20  ;;  %vm530_vm14 = vcmp.lt.s32.totalorder %v527_v9, %v518_v60  ;;  %vm501_vm1 = vcmp.eq.f32.partialorder %v1166_v10, %v482_v15  ;;  %vm503_vm2 = vcmp.eq.f32.partialorder %v1168_v14, %v482_v15 }
  0xe8   : > { %v529_v13 = vsel %vm528_vm13, %v525_v1, %v516_v20  ;;  %v531_v21 = vsel %vm530_vm14, %v527_v9, %v518_v60  ;;  %v509_v22 = vsel %vm493_vm11, %v1185_v46, 64  ;;  %v511_v61 = vsel %vm495_vm12, %v1188_v51, 64  ;;  %v635_v49 = vpop.trf.xlu2 }
  0xe9   : > { %vm532_vm3 = vcmp.lt.s32.totalorder %v529_v13, %v520_v56  ;;  %vm534_vm4 = vcmp.lt.s32.totalorder %v531_v21, %v522_v58  ;;  %v513_v25 = vsel %vm497_vm15, %v1191_v53, 64  ;;  %v515_v57 = vsel %vm499_vm0, %v1194_v54, 64 }
  0xea   : > { %v533_v24 = vsel %vm532_vm3, %v529_v13, %v520_v56  ;;  %v535_v6 = vsel %vm534_vm4, %v531_v21, %v522_v58  ;;  %vm505_vm6 = vcmp.eq.f32.partialorder %v1177_v23, %v482_v15  ;;  %vm507_vm7 = vcmp.eq.f32.partialorder %v1181_v32, %v482_v15 }
  0xeb   : > { %vm536_vm5 = vcmp.lt.s32.totalorder %v533_v24, %v535_v6  ;;  %v517_v10 = vsel %vm501_vm1, %v1197_v55, 64  ;;  %vm547_vm8 = vcmp.lt.s32.totalorder %v509_v22, %v513_v25  ;;  %vm549_vm9 = vcmp.lt.s32.totalorder %v511_v61, %v515_v57 }
  0xec   : > { %v537_v59 = vsel %vm536_vm5, %v533_v24, %v535_v6  ;;  %v519_v27 = vsel %vm503_vm2, %v1200_v62, 64  ;;  %v548_v28 = vsel %vm547_vm8, %v509_v22, %v513_v25  ;;  %v550_v29 = vsel %vm549_vm9, %v511_v61, %v515_v57 }
  0xed   : > { %v538_v26 = vrot.slane %v537_v59, 4  ;;  %v521_v30 = vsel %vm505_vm6, %v1203_v63, 64  ;;  %vm551_vm10 = vcmp.lt.s32.totalorder %v548_v28, %v517_v10  ;;  %vm553_vm11 = vcmp.lt.s32.totalorder %v550_v29, %v519_v27 }
  0xee   : > { %v523_v23 = vsel %vm507_vm7, %v1206_v0, 64  ;;  %v552_v31 = vsel %vm551_vm10, %v548_v28, %v517_v10  ;;  %v554_v32 = vsel %vm553_vm11, %v550_v29, %v519_v27 }
  0xef   : > { %vm539_vm12 = vcmp.lt.s32.totalorder %v537_v59, %v538_v26  ;;  %vm555_vm13 = vcmp.lt.s32.totalorder %v552_v31, %v521_v30  ;;  %vm557_vm14 = vcmp.lt.s32.totalorder %v554_v32, %v523_v23 }
  0xf0   : > { %v540_v33 = vsel %vm539_vm12, %v537_v59, %v538_v26  ;;  %v556_v35 = vsel %vm555_vm13, %v552_v31, %v521_v30  ;;  %v558_v36 = vsel %vm557_vm14, %v554_v32, %v523_v23  ;;  %v636_v50 = vpop.trf.xlu2 }
  0xf1   : > { %v541_v34 = vrot.slane %v540_v33, 2  ;;  %vm559_vm15 = vcmp.lt.s32.totalorder %v556_v35, %v558_v36 }
  0xf2   : > { %v560_v14 = vsel %vm559_vm15, %v556_v35, %v558_v36 }
  0xf3   : > { %vm542_vm0 = vcmp.lt.s32.totalorder %v540_v33, %v541_v34  ;;  %v561_v38 = vrot.slane %v560_v14, 4 }
  0xf4   : > { %v543_v37 = vsel %vm542_vm0, %v540_v33, %v541_v34  ;;  %vm650_vm0 = vcmask 523264  }
  0xf5   : > { %v544_v39 = vrot.slane %v543_v37, 1  ;;  %vm562_vm1 = vcmp.lt.s32.totalorder %v560_v14, %v561_v38 }
  0xf6   : > { %v563_v40 = vsel %vm562_vm1, %v560_v14, %v561_v38 }
  0xf7   : > { %vm545_vm2 = vcmp.lt.s32.totalorder %v543_v37, %v544_v39  ;;  %v564_v42 = vrot.slane %v563_v40, 2 }
  0xf8   : > { %v546_v41 = vsel %vm545_vm2, %v543_v37, %v544_v39  ;;  %v637_v52 = vpop.trf.xlu2 }
  0xf9   : > { %vm584_vm3 = vcmp.eq.s32.totalorder %v1206_v0, %v546_v41  ;;  %vm565_vm4 = vcmp.lt.s32.totalorder %v563_v40, %v564_v42  ;;  %vm582_vm5 = vcmp.eq.s32.totalorder %v1203_v63, %v546_v41  ;;  %vm580_vm6 = vcmp.eq.s32.totalorder %v1200_v62, %v546_v41 }
  0xfa   : > { %927 = vmatpush.msk.msra.mxu2 %vm584_vm3, %v1012_v43  ;;  %v566_v44 = vsel %vm565_vm4, %v563_v40, %v564_v42  ;;  %vm578_vm8 = vcmp.eq.s32.totalorder %v1197_v55, %v546_v41  ;;  %vm576_vm10 = vcmp.eq.s32.totalorder %v1194_v54, %v546_v41  ;;  %vm574_vm12 = vcmp.eq.s32.totalorder %v1191_v53, %v546_v41 }
  0xfb   : > { %v567_v45 = vrot.slane %v566_v44, 1  ;;  %vm572_vm14 = vcmp.eq.s32.totalorder %v1188_v51, %v546_v41  ;;  %vm570_vm1 = vcmp.eq.s32.totalorder %v1185_v46, %v546_v41 }
  0xfc   : > { %928 = vmatpush.msk.msra.mxu2 %vm582_vm5, %v1012_v43 }
  0xfd   : > { %vm568_vm7 = vcmp.lt.s32.totalorder %v566_v44, %v567_v45 }
  0xfe   : > { %929 = vmatpush.msk.msra.mxu2 %vm580_vm6, %v1012_v43  ;;  %v569_v47 = vsel %vm568_vm7, %v566_v44, %v567_v45  ;;  %vm762_vm6 = vcmask 0  }
  0xff   : > { %vm585_vm9 = vcmp.eq.s32.totalorder %v1206_v0, %v569_v47  ;;  %vm583_vm11 = vcmp.eq.s32.totalorder %v1203_v63, %v569_v47  ;;  %vm581_vm13 = vcmp.eq.s32.totalorder %v1200_v62, %v569_v47  ;;  %vm579_vm15 = vcmp.eq.s32.totalorder %v1197_v55, %v569_v47 }
 0x100   : > { %930 = vmatpush.msk.msra.mxu2 %vm578_vm8, %v1012_v43  ;;  %939 = vmatpush.msk.msra.mxu3 %vm585_vm9, %v1012_v43  ;;  %vm577_vm2 = vcmp.eq.s32.totalorder %v1194_v54, %v569_v47  ;;  %vm575_vm3 = vcmp.eq.s32.totalorder %v1191_v53, %v569_v47  ;;  %vm573_vm4 = vcmp.eq.s32.totalorder %v1188_v51, %v569_v47 }
 0x101   : > { %vm571_vm5 = vcmp.eq.s32.totalorder %v1185_v46, %v569_v47 }
 0x102   : > { %931 = vmatpush.msk.msra.mxu2 %vm576_vm10, %v1012_v43  ;;  %940 = vmatpush.msk.msra.mxu3 %vm583_vm11, %v1012_v43 }
 0x104   : > { %932 = vmatpush.msk.msra.mxu2 %vm574_vm12, %v1012_v43  ;;  %941 = vmatpush.msk.msra.mxu3 %vm581_vm13, %v1012_v43 }
 0x106   : > { %933 = vmatpush.msk.msra.mxu2 %vm572_vm14, %v1012_v43  ;;  %942 = vmatpush.msk.msra.mxu3 %vm579_vm15, %v1012_v43 }
 0x108   : > { %934 = vmatpush.msk.msra.mxu2 %vm570_vm1, %v1012_v43  ;;  %943 = vmatpush.msk.msra.mxu3 %vm577_vm2, %v1012_v43 }
 0x109   : > { %935 = vmatmul.msk.f32.vlgmr.msra.gmra.mxu2 %vm650_vm0, %v634_v48 }
 0x10a   : > { %944 = vmatpush.msk.msra.mxu3 %vm575_vm3, %v1012_v43 }
 0x10c   : > { %945 = vmatpush.msk.msra.mxu3 %vm573_vm4, %v1012_v43 }
 0x10e   : > { %946 = vmatpush.msk.msra.mxu3 %vm571_vm5, %v1012_v43 }
 0x10f   : > { %947 = vmatmul.msk.f32.vlgmr.msra.gmra.mxu3 %vm650_vm0, %v634_v48 }
 0x111   : > { %936 = vmatmul.msk.f32.gmra.mxu2 %vm650_vm0, %v635_v49 }
 0x117   : > { %948 = vmatmul.msk.f32.gmra.mxu3 %vm650_vm0, %v635_v49 }
 0x119   : > { %937 = vmatmul.msk.f32.gmra.mxu2 %vm650_vm0, %v636_v50 }
 0x11f   : > { %949 = vmatmul.msk.f32.gmra.mxu3 %vm650_vm0, %v636_v50 }
 0x121   : > { %938 = vmatmul.msk.f32.gmra.mxu2 %vm650_vm0, %v637_v52 }
 0x127   : > { %950 = vmatmul.msk.f32.gmra.mxu3 %vm650_vm0, %v637_v52 }
 0x18c   : > { %v680_v46 = vpop.f32.mrf.mxu2 }
 0x18d   : > { %721 = vst [vmem:[%s1266_s10] sm:$0xff] %v680_v46  ;;  %v729_v54 = vsub.f32 %v680_v46, %v1092_v11 }
 0x18f   : > { %v737_v63 = vmul.f32 %v729_v54, %v729_v54 }
 0x192   : > { %v709_v51 = vpop.f32.mrf.mxu3 }
 0x193   : > { %722 = vst [vmem:[%s1266_s10 + $0x8] sm:$0xff] %v709_v51  ;;  %v730_v55 = vsub.f32 %v709_v51, %v1094_v12 }
 0x194   : > { %v683_v53 = vpop.f32.mrf.mxu2 }
 0x195   : > { %723 = vst [vmem:[%s1266_s10 + $0x10] sm:$0xff] %v683_v53  ;;  %v731_v62 = vsub.f32 %v683_v53, %v1080_v7  ;;  %v738_v0 = vmul.f32 %v730_v55, %v730_v55 }
 0x197   : > { %v739_v16 = vmul.f32 %v731_v62, %v731_v62  ;;  %v745_v18 = vadd.f32 %v738_v0, %v737_v63 }
 0x199   : > { %v746_v60 = vadd.f32 %v745_v18, %v739_v16 }
 0x19a   : > { %v712_v15 = vpop.f32.mrf.mxu3 }
 0x19b   : > { %724 = vst [vmem:[%s1266_s10 + $0x18] sm:$0xff] %v712_v15  ;;  %v732_v19 = vsub.f32 %v712_v15, %v1082_v8 }
 0x19c   : > { %v686_v17 = vpop.f32.mrf.mxu2 }
 0x19d   : > { %725 = vst [vmem:[%s1266_s10 + $0x20] sm:$0xff] %v686_v17  ;;  %v733_v20 = vsub.f32 %v686_v17, %v1071_v4  ;;  %v740_v11 = vmul.f32 %v732_v19, %v732_v19 }
 0x19f   : > { %v741_v12 = vmul.f32 %v733_v20, %v733_v20  ;;  %v747_v7 = vadd.f32 %v746_v60, %v740_v11 }
 0x1a1   : > { %v748_v13 = vadd.f32 %v747_v7, %v741_v12 }
 0x1a2   : > { %v715_v56 = vpop.f32.mrf.mxu3 }
 0x1a3   : > { %726 = vst [vmem:[%s1266_s10 + $0x28] sm:$0xff] %v715_v56  ;;  %v734_v58 = vsub.f32 %v715_v56, %v1075_v5 }
 0x1a4   : > { %v689_v1 = vpop.f32.mrf.mxu2 }
 0x1a5   : > { %727 = vst [vmem:[%s1266_s10 + $0x30] sm:$0xff] %v689_v1  ;;  %v735_v9 = vsub.f32 %v689_v1, %v1067_v2  ;;  %v742_v21 = vmul.f32 %v734_v58, %v734_v58 }
 0x1a7   : > { %v743_v22 = vmul.f32 %v735_v9, %v735_v9  ;;  %v749_v61 = vadd.f32 %v748_v13, %v742_v21 }
 0x1a9   : > { %v750_v4 = vadd.f32 %v749_v61, %v743_v22 }
 0x1aa   : > { %v718_v8 = vpop.f32.mrf.mxu3 }
 0x1ab   : > { %728 = vst [vmem:[%s1266_s10 + $0x38] sm:$0xff] %v718_v8  ;;  %v736_v24 = vsub.f32 %v718_v8, %v1069_v3 }
 0x1ad   : > { %v744_v6 = vmul.f32 %v736_v24, %v736_v24 }
 0x1af   : > { %v751_v25 = vadd.f32 %v750_v4, %v744_v6 }
 0x1b1   : > { %752 = vadd.xlane.f32.xlu0 %v751_v25 }
 0x224   : > { %v753_v57 = vpop.xlane.xlu0 %752 }
 0x225   : > { %v754_v59 = vrot.slane %v753_v57, 4 }
 0x227   : > { %v755_v5 = vadd.f32 %v754_v59, %v753_v57 }
 0x229   : > { %v756_v10 = vrot.slane %v755_v5, 2 }
 0x22b   : > { %v757_v26 = vadd.f32 %v756_v10, %v755_v5 }
 0x22d   : > { %v758_v27 = vrot.slane %v757_v26, 1 }
 0x22f   : > { %v759_v2 = vadd.f32 %v758_v27, %v757_v26 }
 0x231   : > { %955 = vpush %v759_v2 }
 0x262   : > { %s956_s13 = spop %955 }
 0x263   : > { %v761_v28 = vstv %s956_s13 }
 0x264   : > { %763 = vst.msk [vmem:[%s253_s12] sm:$0x1] %vm762_vm6, %v761_v28 }
 0x265 PF: > { %s15_s17 = sadd.s32 1, %s1009_s17   ;;  %s1302_s15 = smov %s1005_s16 }
 0x266   : > { %p12_p5 = scmp.ge.s32.totalorder %s15_s17, 4   ;;  %s1303_s16 = smov %s1305_s18 }
 0x268   :  { %14 = sbr.rel (!%p12_p5) target bundleno = 2 (0x2), region = 74 }

</bundles_post_ra>
